<compile_context>
chip_gen: v6e
topology: v6e:2x2x1
jax: 0.10.0
libtpu: 0.0.40
codegen_flags: <defaults>
</compile_context>

<pallas_src>
import jax
import jax.numpy as jnp
import numpy as np
from jax.experimental import pallas as pl
from jax.experimental.pallas import tpu as pltpu

P = 128                 # lane width for the wide (>=32-out) layers
XLANES = 32             # packed input lanes (20 real features, padded)
OLANES = 8              # packed output lanes (3 logits, padded)
TB_MAX = 1024           # max batch tile (rows) per grid step
BN_EPS = 1e-5
BN_SCALE = float(1.0 / np.sqrt(1.0 + BN_EPS))   # eval-mode BN affine at init

# model dims (from the PyTorch module __init__ defaults)
NV, NS, NR, NT, ND, NC = 8, 4, 2, 3, 3, 3
NCTX = NT + ND                  # 6
NIN = NV + NS + NR + NCTX       # 20 packed input features
EMB = 64
HEADS = 4
HD = EMB // HEADS               # 16
NW = 5                          # fused 128x128 weight tiles (layer2, WvWo, k1, k2, k3)


# ----------------------------------------------------------------------------
# Pallas kernel: whole forward pass for one batch tile of TB rows.
# ----------------------------------------------------------------------------
def _triage_kernel(x_ref, w1_ref, w_ref, b_ref, o_ref):
    x = x_ref[...]                      # (TB, 32) bf16, lanes 0..19 real features
    b = b_ref[...]                      # (8, 128)  f32 packed biases (1 vreg)

    relu = lambda t: jnp.maximum(t, 0.0)

    def mm(h, w, k):
        # bf16 MXU matmul with f32 accumulation; bias add in f32.
        return (jnp.dot(h.astype(jnp.bfloat16), w,
                        preferred_element_type=jnp.float32)
                + b[k:k + 1, :])

    # pathways layer 1 (block-diagonal, BN folded): all four pathways end in ReLU
    h1 = relu(mm(x, w1_ref[...], 0))                     # lanes: 64|32|16|16
    # pathways layer 2 (block-diagonal): only the vital block (lanes 0..31) has
    # BN+ReLU; symptom/risk/context second Linear has no activation.
    z2 = mm(h1, w_ref[0], 1)                             # lanes: 32|16|8|8 |zeros
    lane = jax.lax.broadcasted_iota(jnp.int32, (1, P), 1)
    h2 = jnp.where(lane < 32, relu(z2), z2)              # == torch.cat(pathways)
    # MultiheadAttention with seq_len == 1: softmax over one key == 1 exactly,
    # so attended = out_proj(v_proj(combined)); Wv@Wo pre-folded -> one matmul.
    att = mm(h2, w_ref[1], 2)
    # classifier (BN of first layer folded into tile); Dropout = identity (eval).
    h = relu(mm(att, w_ref[2], 3))
    h = relu(mm(h, w_ref[3], 4))
    logits = mm(h, w_ref[4], 5)                          # logits in lanes 0..2
    o_ref[...] = logits[:, :OLANES]                      # narrow (TB, 8) store


# ----------------------------------------------------------------------------
# Parameter init (deterministic, Xavier-uniform weights, zero biases)
# ----------------------------------------------------------------------------
def init_params(key):
    ks = jax.random.split(key, 16)

    def xavier(k, fi, fo):
        a = float(np.sqrt(6.0 / (fi + fo)))
        return jax.random.uniform(k, (fi, fo), jnp.float32, -a, a)

    p = {}
    p["vW1"] = xavier(ks[0], NV, 64);   p["vb1"] = jnp.zeros((64,), jnp.float32)
    p["vW2"] = xavier(ks[1], 64, 32);   p["vb2"] = jnp.zeros((32,), jnp.float32)
    p["sW1"] = xavier(ks[2], NS, 32);   p["sb1"] = jnp.zeros((32,), jnp.float32)
    p["sW2"] = xavier(ks[3], 32, 16);   p["sb2"] = jnp.zeros((16,), jnp.float32)
    p["rW1"] = xavier(ks[4], NR, 16);   p["rb1"] = jnp.zeros((16,), jnp.float32)
    p["rW2"] = xavier(ks[5], 16, 8);    p["rb2"] = jnp.zeros((8,), jnp.float32)
    p["cW1"] = xavier(ks[6], NCTX, 16); p["cb1"] = jnp.zeros((16,), jnp.float32)
    p["cW2"] = xavier(ks[7], 16, 8);    p["cb2"] = jnp.zeros((8,), jnp.float32)
    # Wq/bq/Wk/bk are kept only for the pure-JAX reference; they cancel exactly
    # for seq_len == 1 and are intentionally NOT packed into the kernel operands.
    p["Wq"] = xavier(ks[8], EMB, EMB);  p["bq"] = jnp.zeros((EMB,), jnp.float32)
    p["Wk"] = xavier(ks[9], EMB, EMB);  p["bk"] = jnp.zeros((EMB,), jnp.float32)
    p["Wv"] = xavier(ks[10], EMB, EMB); p["bv"] = jnp.zeros((EMB,), jnp.float32)
    p["Wo"] = xavier(ks[11], EMB, EMB); p["bo"] = jnp.zeros((EMB,), jnp.float32)
    p["kW1"] = xavier(ks[12], EMB, 32); p["kb1"] = jnp.zeros((32,), jnp.float32)
    p["kW2"] = xavier(ks[13], 32, 16);  p["kb2"] = jnp.zeros((16,), jnp.float32)
    p["kW3"] = xavier(ks[14], 16, NC);  p["kb3"] = jnp.zeros((NC,), jnp.float32)
    return p


# ----------------------------------------------------------------------------
# One-time packing: block-diag pathway fusion + BN fold + Wv@Wo fold.
# NOTE: the BN fold is exact only for init-state running stats (mean=0, var=1,
# gamma=1, beta=0). For trained checkpoints, fold the actual stats here.
# ----------------------------------------------------------------------------
def prepare_params(p):
    f32 = jnp.float32

    # pathway layer 1: input lanes  [vital 0:8 | sym 8:12 | risk 12:14 | ctx 14:20]
    #                  output lanes [vital 0:64 | sym 64:96 | risk 96:112 | ctx 112:128]
    w1 = jnp.zeros((XLANES, P), f32)
    w1 = w1.at[0:8,    0:64  ].set(p["vW1"] * BN_SCALE)
    w1 = w1.at[8:12,   64:96 ].set(p["sW1"] * BN_SCALE)
    w1 = w1.at[12:14,  96:112].set(p["rW1"])
    w1 = w1.at[14:20, 112:128].set(p["cW1"])
    b1 = jnp.zeros((P,), f32)
    b1 = b1.at[0:64  ].set(p["vb1"] * BN_SCALE)
    b1 = b1.at[64:96 ].set(p["sb1"] * BN_SCALE)
    b1 = b1.at[96:112].set(p["rb1"])
    b1 = b1.at[112:128].set(p["cb1"])

    # pathway layer 2: output lanes [vital 0:32 | sym 32:48 | risk 48:56 | ctx 56:64]
    # (this IS the torch.cat layout consumed by attention)
    w2 = jnp.zeros((P, P), f32)
    w2 = w2.at[0:64,    0:32].set(p["vW2"] * BN_SCALE)
    w2 = w2.at[64:96,  32:48].set(p["sW2"])
    w2 = w2.at[96:112, 48:56].set(p["rW2"])
    w2 = w2.at[112:128, 56:64].set(p["cW2"])
    b2 = jnp.zeros((P,), f32)
    b2 = b2.at[0:32 ].set(p["vb2"] * BN_SCALE)
    b2 = b2.at[32:48].set(p["sb2"])
    b2 = b2.at[48:56].set(p["rb2"])
    b2 = b2.at[56:64].set(p["cb2"])

    def padw(w, scale=1.0):
        return jnp.zeros((P, P), f32).at[:w.shape[0], :w.shape[1]].set(w * scale)

    def padb(b, scale=1.0):
        return jnp.zeros((P,), f32).at[:b.shape[0]].set(b * scale)

    # seq_len==1 attention: attended = (x @ Wv + bv) @ Wo + bo  ->  exact fold
    wvo = padw(p["Wv"] @ p["Wo"])
    bvo = padb(p["bv"] @ p["Wo"] + p["bo"])

    k1 = padw(p["kW1"], BN_SCALE);  c1 = padb(p["kb1"], BN_SCALE)
    k2 = padw(p["kW2"]);            c2 = padb(p["kb2"])
    k3 = padw(p["kW3"]);            c3 = padb(p["kb3"])

    w1_bf16 = w1.astype(jnp.bfloat16)                              # (32, 128)
    w_stack = jnp.stack([w2, wvo, k1, k2, k3]).astype(jnp.bfloat16)  # (5,128,128)
    b_stack = jnp.zeros((8, P), f32)                               # rows 6,7 = pad
    for i, bb in enumerate([b1, b2, bvo, c1, c2, c3]):
        b_stack = b_stack.at[i].set(bb)
    return w1_bf16, w_stack, b_stack


# ----------------------------------------------------------------------------
# Batch-tile choice: large tiles to amortize per-step overhead, but keep >= 4
# grid steps when the batch allows it so v7x's two TensorCores both get work.
# ----------------------------------------------------------------------------
def _choose_tb(B):
    tb = -(-B // 4)                       # cdiv(B, 4): aim for >= 4 tiles
    tb = ((tb + 7) // 8) * 8              # multiple of 8 sublanes
    return int(min(TB_MAX, max(8, tb)))


# ----------------------------------------------------------------------------
# Wrapper: batch-tiled pallas_call with resident weights.
# ----------------------------------------------------------------------------
def forward_pallas(w1, w_stack, b_stack, vital, sym, risk, ctx):
    B = vital.shape[0]
    tb = _choose_tb(B)
    n_tiles = pl.cdiv(B, tb)
    bpad = n_tiles * tb

    x = jnp.concatenate([vital, sym, risk, ctx], axis=1).astype(jnp.bfloat16)
    xp = jnp.zeros((bpad, XLANES), jnp.bfloat16).at[:B, :NIN].set(x)

    out = pl.pallas_call(
        _triage_kernel,
        out_shape=jax.ShapeDtypeStruct((bpad, OLANES), jnp.float32),
        grid=(n_tiles,),
        in_specs=[
            pl.BlockSpec((tb, XLANES), lambda i: (i, 0)),      # batch tile (bf16)
            pl.BlockSpec((XLANES, P), lambda i: (0, 0)),       # layer-1 weight (resident)
            pl.BlockSpec((NW, P, P), lambda i: (0, 0, 0)),     # packed weights (resident)
            pl.BlockSpec((8, P), lambda i: (0, 0)),            # packed biases  (resident)
        ],
        out_specs=pl.BlockSpec((tb, OLANES), lambda i: (i, 0)),
        compiler_params=pltpu.CompilerParams(
            dimension_semantics=("parallel",)),                # both TCs on v7x
    )(xp, w1, w_stack, b_stack)
    return out[:B, :NC]


forward_pallas_jit = jax.jit(forward_pallas)


# ----------------------------------------------------------------------------
# Pure-JAX reference (mirrors the PyTorch eval-mode forward, full attention math)
# ----------------------------------------------------------------------------
def forward_ref(p, vital, sym, risk, ctx):
    relu = lambda x: jnp.maximum(x, 0.0)
    bn = lambda x: x / np.sqrt(1.0 + BN_EPS)

    vf = relu(bn(vital @ p["vW1"] + p["vb1"]))
    vf = relu(bn(vf @ p["vW2"] + p["vb2"]))
    sf = relu(bn(sym @ p["sW1"] + p["sb1"]))
    sf = sf @ p["sW2"] + p["sb2"]
    rf = relu(risk @ p["rW1"] + p["rb1"]) @ p["rW2"] + p["rb2"]
    cf = relu(ctx @ p["cW1"] + p["cb1"]) @ p["cW2"] + p["cb2"]
    c = jnp.concatenate([vf, sf, rf, cf], axis=1)            # (B, 64)
    B = c.shape[0]

    q = (c @ p["Wq"] + p["bq"]).reshape(B, HEADS, HD)
    k = (c @ p["Wk"] + p["bk"]).reshape(B, HEADS, HD)
    v = (c @ p["Wv"] + p["bv"]).reshape(B, HEADS, HD)
    scores = (q * k).sum(-1) / np.sqrt(HD)                    # (B, H); 1x1 seq
    w = jax.nn.softmax(scores[..., None, None], axis=-1)      # softmax over 1 key == 1
    att = (w[..., 0, 0][..., None] * v).reshape(B, EMB) @ p["Wo"] + p["bo"]

    h = relu(bn(att @ p["kW1"] + p["kb1"]))
    h = relu(h @ p["kW2"] + p["kb2"])
    return h @ p["kW3"] + p["kb3"]


if __name__ == "__main__":
    key = jax.random.PRNGKey(0)
    kp, kv, ks, kr, kc = jax.random.split(key, 5)

    params = init_params(kp)
    w1, w_stack, b_stack = prepare_params(params)   # packed once, reused every call

    B = 2
    vital = jax.random.normal(kv, (B, NV), jnp.float32)
    sym = jax.random.normal(ks, (B, NS), jnp.float32)
    risk = jax.random.normal(kr, (B, NR), jnp.float32)
    ctx = jax.random.normal(kc, (B, NCTX), jnp.float32)

    out = forward_pallas_jit(w1, w_stack, b_stack, vital, sym, risk, ctx)
    out = jax.block_until_ready(out)

    ref = forward_ref(params, vital, sym, risk, ctx)
    err = float(jnp.max(jnp.abs(out - ref)))
    # bf16 input/weight storage + bf16 MXU path -> slightly wider tolerance.
    if not np.isfinite(err) or err > 2e-2:
        raise AssertionError(f"Pallas output mismatch vs reference: max abs err = {err}")

    print("KERNEL_OK")
</pallas_src>

<mosaic_0001>
module attributes {stable_mosaic.version = 11 : i64} {
  func.func @_triage_kernel(%arg0: i32, %arg1: memref<8x32xbf16, #tpu.memory_space<vmem>>, %arg2: memref<32x128xbf16, #tpu.memory_space<vmem>>, %arg3: memref<5x128x128xbf16, #tpu.memory_space<vmem>>, %arg4: memref<8x128xf32, #tpu.memory_space<vmem>>, %arg5: memref<8x8xf32, #tpu.memory_space<vmem>>) attributes {dimension_semantics = [#tpu.dimension_semantics<parallel>], iteration_bounds = array<i64: 1>, scalar_prefetch = 0 : i64, scratch_operands = 0 : i64, tpu.core_type = #tpu.core_type<tc>, window_params = [{transform_indices = @transform_0, window_bounds = array<i64: 8, 32>}, {pipeline_mode = #tpu.pipeline_mode<synchronous>, transform_indices = @transform_1, window_bounds = array<i64: 32, 128>}, {pipeline_mode = #tpu.pipeline_mode<synchronous>, transform_indices = @transform_2, window_bounds = array<i64: 5, 128, 128>}, {pipeline_mode = #tpu.pipeline_mode<synchronous>, transform_indices = @transform_3, window_bounds = array<i64: 8, 128>}, {transform_indices = @transform_4, window_bounds = array<i64: 8, 8>}]} {
    %c0 = arith.constant 0 : index
    %c0_0 = arith.constant 0 : index
    %0 = vector.load %arg1[%c0, %c0_0] : memref<8x32xbf16, #tpu.memory_space<vmem>>, vector<8x32xbf16>
    %c0_1 = arith.constant 0 : index
    %c0_2 = arith.constant 0 : index
    %1 = vector.load %arg4[%c0_1, %c0_2] : memref<8x128xf32, #tpu.memory_space<vmem>>, vector<8x128xf32>
    %c0_3 = arith.constant 0 : index
    %c0_4 = arith.constant 0 : index
    %2 = vector.load %arg2[%c0_3, %c0_4] : memref<32x128xbf16, #tpu.memory_space<vmem>>, vector<32x128xbf16>
    %cst = arith.constant dense<0.000000e+00> : vector<8x128xf32>
    %3 = tpu.matmul %0, %2, %cst {dimension_numbers = #tpu.dot_dimension_numbers<[1], [0], [0], [1], [0, 0, 1, 1], [], []>} : vector<8x32xbf16>, vector<32x128xbf16>, vector<8x128xf32> -> vector<8x128xf32>
    %4 = vector.extract_strided_slice %1 {offsets = [0, 0], sizes = [1, 128], strides = [1, 1]} : vector<8x128xf32> to vector<1x128xf32>
    %5 = vector.broadcast %4 : vector<1x128xf32> to vector<8x128xf32>
    %6 = arith.addf %3, %5 : vector<8x128xf32>
    %cst_5 = arith.constant 0.000000e+00 : f32
    %7 = vector.broadcast %cst_5 : f32 to vector<8x128xf32>
    %8 = arith.maximumf %6, %7 : vector<8x128xf32>
    %c0_6 = arith.constant 0 : index
    %c0_7 = arith.constant 0 : index
    %c0_8 = arith.constant 0 : index
    %9 = vector.load %arg3[%c0_6, %c0_7, %c0_8] : memref<5x128x128xbf16, #tpu.memory_space<vmem>>, vector<1x128x128xbf16>
    %10 = vector.shape_cast %9 : vector<1x128x128xbf16> to vector<128x128xbf16>
    %11 = arith.truncf %8 : vector<8x128xf32> to vector<8x128xbf16>
    %cst_9 = arith.constant dense<0.000000e+00> : vector<8x128xf32>
    %12 = tpu.matmul %11, %10, %cst_9 {dimension_numbers = #tpu.dot_dimension_numbers<[1], [0], [0], [1], [0, 0, 1, 1], [], []>} : vector<8x128xbf16>, vector<128x128xbf16>, vector<8x128xf32> -> vector<8x128xf32>
    %13 = vector.extract_strided_slice %1 {offsets = [1, 0], sizes = [1, 128], strides = [1, 1]} : vector<8x128xf32> to vector<1x128xf32>
    %14 = vector.broadcast %13 : vector<1x128xf32> to vector<8x128xf32>
    %15 = arith.addf %12, %14 : vector<8x128xf32>
    %16 = tpu.iota {dimensions = array<i32: 1>} : vector<1x128xi32>
    %c32_i32 = arith.constant 32 : i32
    %17 = vector.broadcast %c32_i32 : i32 to vector<1x128xi32>
    %18 = arith.cmpi slt, %16, %17 : vector<1x128xi32>
    %cst_10 = arith.constant 0.000000e+00 : f32
    %19 = vector.broadcast %cst_10 : f32 to vector<8x128xf32>
    %20 = arith.maximumf %15, %19 : vector<8x128xf32>
    %21 = vector.shape_cast %18 : vector<1x128xi1> to vector<1x128xi1>
    %22 = vector.broadcast %21 : vector<1x128xi1> to vector<8x128xi1>
    %23 = arith.select %22, %20, %15 : vector<8x128xi1>, vector<8x128xf32>
    %c1 = arith.constant 1 : index
    %c0_11 = arith.constant 0 : index
    %c0_12 = arith.constant 0 : index
    %24 = vector.load %arg3[%c1, %c0_11, %c0_12] : memref<5x128x128xbf16, #tpu.memory_space<vmem>>, vector<1x128x128xbf16>
    %25 = vector.shape_cast %24 : vector<1x128x128xbf16> to vector<128x128xbf16>
    %26 = arith.truncf %23 : vector<8x128xf32> to vector<8x128xbf16>
    %cst_13 = arith.constant dense<0.000000e+00> : vector<8x128xf32>
    %27 = tpu.matmul %26, %25, %cst_13 {dimension_numbers = #tpu.dot_dimension_numbers<[1], [0], [0], [1], [0, 0, 1, 1], [], []>} : vector<8x128xbf16>, vector<128x128xbf16>, vector<8x128xf32> -> vector<8x128xf32>
    %28 = vector.extract_strided_slice %1 {offsets = [2, 0], sizes = [1, 128], strides = [1, 1]} : vector<8x128xf32> to vector<1x128xf32>
    %29 = vector.broadcast %28 : vector<1x128xf32> to vector<8x128xf32>
    %30 = arith.addf %27, %29 : vector<8x128xf32>
    %c2 = arith.constant 2 : index
    %c0_14 = arith.constant 0 : index
    %c0_15 = arith.constant 0 : index
    %31 = vector.load %arg3[%c2, %c0_14, %c0_15] : memref<5x128x128xbf16, #tpu.memory_space<vmem>>, vector<1x128x128xbf16>
    %32 = vector.shape_cast %31 : vector<1x128x128xbf16> to vector<128x128xbf16>
    %33 = arith.truncf %30 : vector<8x128xf32> to vector<8x128xbf16>
    %cst_16 = arith.constant dense<0.000000e+00> : vector<8x128xf32>
    %34 = tpu.matmul %33, %32, %cst_16 {dimension_numbers = #tpu.dot_dimension_numbers<[1], [0], [0], [1], [0, 0, 1, 1], [], []>} : vector<8x128xbf16>, vector<128x128xbf16>, vector<8x128xf32> -> vector<8x128xf32>
    %35 = vector.extract_strided_slice %1 {offsets = [3, 0], sizes = [1, 128], strides = [1, 1]} : vector<8x128xf32> to vector<1x128xf32>
    %36 = vector.broadcast %35 : vector<1x128xf32> to vector<8x128xf32>
    %37 = arith.addf %34, %36 : vector<8x128xf32>
    %cst_17 = arith.constant 0.000000e+00 : f32
    %38 = vector.broadcast %cst_17 : f32 to vector<8x128xf32>
    %39 = arith.maximumf %37, %38 : vector<8x128xf32>
    %c3 = arith.constant 3 : index
    %c0_18 = arith.constant 0 : index
    %c0_19 = arith.constant 0 : index
    %40 = vector.load %arg3[%c3, %c0_18, %c0_19] : memref<5x128x128xbf16, #tpu.memory_space<vmem>>, vector<1x128x128xbf16>
    %41 = vector.shape_cast %40 : vector<1x128x128xbf16> to vector<128x128xbf16>
    %42 = arith.truncf %39 : vector<8x128xf32> to vector<8x128xbf16>
    %cst_20 = arith.constant dense<0.000000e+00> : vector<8x128xf32>
    %43 = tpu.matmul %42, %41, %cst_20 {dimension_numbers = #tpu.dot_dimension_numbers<[1], [0], [0], [1], [0, 0, 1, 1], [], []>} : vector<8x128xbf16>, vector<128x128xbf16>, vector<8x128xf32> -> vector<8x128xf32>
    %44 = vector.extract_strided_slice %1 {offsets = [4, 0], sizes = [1, 128], strides = [1, 1]} : vector<8x128xf32> to vector<1x128xf32>
    %45 = vector.broadcast %44 : vector<1x128xf32> to vector<8x128xf32>
    %46 = arith.addf %43, %45 : vector<8x128xf32>
    %cst_21 = arith.constant 0.000000e+00 : f32
    %47 = vector.broadcast %cst_21 : f32 to vector<8x128xf32>
    %48 = arith.maximumf %46, %47 : vector<8x128xf32>
    %c4 = arith.constant 4 : index
    %c0_22 = arith.constant 0 : index
    %c0_23 = arith.constant 0 : index
    %49 = vector.load %arg3[%c4, %c0_22, %c0_23] : memref<5x128x128xbf16, #tpu.memory_space<vmem>>, vector<1x128x128xbf16>
    %50 = vector.shape_cast %49 : vector<1x128x128xbf16> to vector<128x128xbf16>
    %51 = arith.truncf %48 : vector<8x128xf32> to vector<8x128xbf16>
    %cst_24 = arith.constant dense<0.000000e+00> : vector<8x128xf32>
    %52 = tpu.matmul %51, %50, %cst_24 {dimension_numbers = #tpu.dot_dimension_numbers<[1], [0], [0], [1], [0, 0, 1, 1], [], []>} : vector<8x128xbf16>, vector<128x128xbf16>, vector<8x128xf32> -> vector<8x128xf32>
    %53 = vector.extract_strided_slice %1 {offsets = [5, 0], sizes = [1, 128], strides = [1, 1]} : vector<8x128xf32> to vector<1x128xf32>
    %54 = vector.broadcast %53 : vector<1x128xf32> to vector<8x128xf32>
    %55 = arith.addf %52, %54 : vector<8x128xf32>
    %56 = vector.extract_strided_slice %55 {offsets = [0, 0], sizes = [8, 8], strides = [1, 1]} : vector<8x128xf32> to vector<8x8xf32>
    %c0_25 = arith.constant 0 : index
    %c0_26 = arith.constant 0 : index
    %57 = vector.load %arg5[%c0_25, %c0_26] : memref<8x8xf32, #tpu.memory_space<vmem>>, vector<8x8xf32>
    tpu.vector_store %arg5[%c0_25, %c0_26], %56 {strides = array<i32>} : memref<8x8xf32, #tpu.memory_space<vmem>>, vector<8x8xf32>,
    return
  }
  func.func @transform_0(%arg0: i32) -> (i32, i32) {
    %c0_i32 = arith.constant 0 : i32
    %c0_i32_0 = arith.constant 0 : i32
    return %arg0, %c0_i32 : i32, i32
  }
  func.func @transform_1(%arg0: i32) -> (i32, i32) {
    %c0_i32 = arith.constant 0 : i32
    %c0_i32_0 = arith.constant 0 : i32
    %c0_i32_1 = arith.constant 0 : i32
    return %c0_i32, %c0_i32_0 : i32, i32
  }
  func.func @transform_2(%arg0: i32) -> (i32, i32, i32) {
    %c0_i32 = arith.constant 0 : i32
    %c0_i32_0 = arith.constant 0 : i32
    %c0_i32_1 = arith.constant 0 : i32
    %c0_i32_2 = arith.constant 0 : i32
    return %c0_i32, %c0_i32_0, %c0_i32_1 : i32, i32, i32
  }
  func.func @transform_3(%arg0: i32) -> (i32, i32) {
    %c0_i32 = arith.constant 0 : i32
    %c0_i32_0 = arith.constant 0 : i32
    %c0_i32_1 = arith.constant 0 : i32
    return %c0_i32, %c0_i32_0 : i32, i32
  }
  func.func @transform_4(%arg0: i32) -> (i32, i32) {
    %c0_i32 = arith.constant 0 : i32
    %c0_i32_0 = arith.constant 0 : i32
    return %arg0, %c0_i32 : i32, i32
  }
}

</mosaic_0001>

<bundles_post_ra>
// kernel: forward_pallas.1
= control target key start
LH: loop header
LB: loop body
LE: loop exit
PB: predicated region body
PF: predicated region fallthrough
CT: control target
= control target key end

     0   :  { %9 = vsyncpa [#allocation3], 0  ;;  %s1087_s0 = inlined_call_operand.vmem [shape: bf16[8,32], index: 0, kind: input, shape index: {}]   ;;  %s1088_s1 = inlined_call_operand.vmem [shape: bf16[32,128], index: 1, kind: input, shape index: {}]   ;;  %s1089_s2 = inlined_call_operand.hbm [shape: bf16[5,128,128], index: 2, kind: input, shape index: {}]   ;;  %s1090_s3 = inlined_call_operand.hbm [shape: f32[8,128], index: 3, kind: input, shape index: {}]   ;;  %s1091_s4 = inlined_call_operand.vmem [shape: f32[8,8], index: 4, kind: output, shape index: {}]  }
   0x1   :  { %10 = vsyncpa [#allocation5], 0  ;;  %s968_s15 = smov [#allocation2]  }
   0x2   :  { %s20_s16 = sshll.u32 %s968_s15, 4  ;;  %s21_s16 = int_to_ptr.vmem [resolvable:$true] %s20_s16 }
   0x3   :  { %s932_s17 = scalar_lea.vmem %s21_s16, 5120  ;;  %p937_p1 = scmp.lt.s32.totalorder %s21_s16, %s21_s16 }
   0x4   :  { %p933_p0 = scmp.ne.s32.totalorder %s21_s16, %s932_s17  ;;  %p938_p2 = scmp.lt.s32.totalorder %s932_s17, %s932_s17 }
   0x6   :  { %p939_p3 = por %p938_p2, %p937_p1 }
   0x8   :  { %p940_p4 = pnand %p939_p3, %p933_p0 }
   0xa   :  { %943 = shalt.err (!%p940_p4)
}
   0xb   :  { %s969_s18 = smov 64   ;;  %s970_s19 = smov 4  }
   0xc   :  { %26 = dma.hbm_to_vmem [thread:$0]  %s1089_s2, 5120, %s21_s16, [#allocation3], %s969_s18, %s969_s18, %s970_s19  }
   0xd   :  { %s971_s22 = smov [#allocation4]  }
   0xe   :  { %s33_s23 = sshll.u32 %s971_s22, 4  ;;  %s34_s23 = int_to_ptr.vmem [resolvable:$true] %s33_s23 }
   0xf   :  { %s952_s24 = scalar_lea.vmem %s34_s23, 128  ;;  %p957_p6 = scmp.lt.s32.totalorder %s34_s23, %s34_s23 }
  0x10   :  { %p953_p5 = scmp.ne.s32.totalorder %s34_s23, %s952_s24  ;;  %p958_p7 = scmp.lt.s32.totalorder %s952_s24, %s952_s24 }
  0x12   :  { %p959_p8 = por %p958_p7, %p957_p6 }
  0x14   :  { %p960_p9 = pnand %p959_p8, %p953_p5 }
  0x16   :  { %963 = shalt.err (!%p960_p9)
}
  0x17   :  { %36 = dma.hbm_to_vmem [thread:$0]  %s1090_s3, 128, %s34_s23, [#allocation5]  }
  0x18   :  { %964 = dma.done.wait [#allocation3], 5120  }
  0x19   :  { %965 = vsyncadd [#allocation3], 4294962176 }
  0x1a   :  { %966 = dma.done.wait [#allocation5], 128  }
  0x1b   :  { %967 = vsyncadd [#allocation5], 4294967168  ;;  %v972_v0 = vmov 0.0   ;;  %vm973_vm0 = vmmov 0   ;;  %v882_v1 = vld [vmem:[%s1088_s1 + $0x8] sm:$0xff]   ;;  %v883_v2 = vld [vmem:[%s1088_s1] sm:$0xff]   ;;  %v50_v18 = vlaneseq }
  0x1c   :  { %768 = vmatprep.subr.bf16.mxu0 %v972_v0  ;;  %772 = vmatprep.mubr.msk.bf16.mxu0 %vm973_vm0, %v972_v0  ;;  %v884_v3 = vld [vmem:[#allocation2 + $0x38] sm:$0xff]   ;;  %vm66_vm1 = vcmask 261120   ;;  %v885_v4 = vld [vmem:[#allocation2 + $0x30] sm:$0xff]   ;;  %v44_v5 = vld [vmem:[%s1087_s0] sm:$0xf]  ;;  %vm669_vm3 = vcmask 64512  }
  0x1d   :  { %776 = vmatprep.subr.bf16.mxu1 %v972_v0  ;;  %792 = vmatprep.mubr.msk.bf16.mxu1 %vm973_vm0, %v972_v0  ;;  %v886_v6 = vld [vmem:[#allocation2 + $0x28] sm:$0xff]   ;;  %v887_v7 = vld [vmem:[#allocation2 + $0x20] sm:$0xff]   ;;  %v888_v8 = vld [vmem:[#allocation2 + $0x18] sm:$0xff]   ;;  %v1038_v19 = vshrl.u32 %v50_v18, 7  ;;  %v221_v41 = vand.u32 127, %v50_v18 }
  0x1e   :  { %769 = vmatpush3.bf16.msra.mxu0 %v882_v1  ;;  %777 = vmatpush3.bf16.msra.mxu1 %v884_v3  ;;  %v889_v9 = vld [vmem:[#allocation2 + $0x10] sm:$0xff]   ;;  %v890_v10 = vld [vmem:[#allocation2 + $0x8] sm:$0xff]   ;;  %v891_v11 = vld [vmem:[#allocation2] sm:$0xff]  }
  0x1f   :  { %770 = vmatprep.subr.bf16.mxu0 %v972_v0  ;;  %778 = vmatprep.subr.bf16.mxu1 %v972_v0  ;;  %v892_v12 = vld [vmem:[#allocation2 + $0x78] sm:$0xff]   ;;  %v893_v13 = vld [vmem:[#allocation2 + $0x70] sm:$0xff]   ;;  %v894_v14 = vld [vmem:[#allocation2 + $0x68] sm:$0xff]   ;;  %v52_v20 = vsub.s32 0, %v1038_v19  ;;  %v130_v39 = vsub.s32 1, %v1038_v19  ;;  %vm222_vm2 = vcmp.lt.s32.totalorder %v221_v41, 32 }
  0x20   :  { %v895_v15 = vld [vmem:[#allocation2 + $0x60] sm:$0xff]   ;;  %v896_v16 = vld [vmem:[#allocation2 + $0x58] sm:$0xff]   ;;  %v897_v17 = vld [vmem:[#allocation2 + $0x50] sm:$0xff]   ;;  %v247_v57 = vsub.s32 2, %v1038_v19 }
  0x21   :  { %v1041_v21 = vld [vmem:[#allocation4] sm:$0xff]  ;;  %v898_v30 = vld [vmem:[#allocation2 + $0x48] sm:$0xff]   ;;  %v900_v32 = vld [vmem:[#allocation2 + $0xb8] sm:$0xff]  }
  0x22   :  { %771 = vmatpush3.bf16.msra.mxu0 %v883_v2  ;;  %779 = vmatpush3.bf16.msra.mxu1 %v885_v4  ;;  %v53_v22 = vrot.slane %v1041_v21, %v52_v20  ;;  %v899_v31 = vld [vmem:[#allocation2 + $0x40] sm:$0xff]   ;;  %v901_v33 = vld [vmem:[#allocation2 + $0xb0] sm:$0xff]   ;;  %v902_v34 = vld [vmem:[#allocation2 + $0xa8] sm:$0xff]   ;;  %v131_v40 = vrot.slane %v1041_v21, %v130_v39  ;;  %v248_v58 = vrot.slane %v1041_v21, %v247_v57 }
  0x23   :  { %796 = vmatprep.subr.bf16.mxu0 %v972_v0  ;;  %780 = vmatprep.subr.bf16.mxu1 %v972_v0  ;;  %v903_v35 = vld [vmem:[#allocation2 + $0xa0] sm:$0xff]   ;;  %v904_v36 = vld [vmem:[#allocation2 + $0x98] sm:$0xff]   ;;  %v905_v37 = vld [vmem:[#allocation2 + $0x90] sm:$0xff]  }
  0x24   :  { %v906_v38 = vld [vmem:[#allocation2 + $0x88] sm:$0xff]   ;;  %v907_v50 = vld [vmem:[#allocation2 + $0x80] sm:$0xff]   ;;  %v908_v51 = vld [vmem:[#allocation2 + $0xf8] sm:$0xff]  }
  0x25   :  { %773 = vmatmul.mubr.msk.bf16.vlgmr.msra.gmra.mxu0 %vm66_vm1, %v44_v5  ;;  %v909_v52 = vld [vmem:[#allocation2 + $0xf0] sm:$0xff]   ;;  %v910_v53 = vld [vmem:[#allocation2 + $0xe8] sm:$0xff]   ;;  %v911_v54 = vld [vmem:[#allocation2 + $0xe0] sm:$0xff]  }
  0x26   :  { %812 = vmatprep.mubr.msk.bf16.mxu0 %vm973_vm0, %v972_v0  ;;  %781 = vmatpush3.bf16.msra.mxu1 %v886_v6  ;;  %v912_v55 = vld [vmem:[#allocation2 + $0xd8] sm:$0xff]   ;;  %v913_v56 = vld [vmem:[#allocation2 + $0xd0] sm:$0xff]   ;;  %v914_v2 = vld [vmem:[#allocation2 + $0xc8] sm:$0xff]  }
  0x27   :  { %782 = vmatprep.subr.bf16.mxu1 %v972_v0  ;;  %797 = vmatpush3.bf16.msra.mxu0 %v892_v12  ;;  %v915_v3 = vld [vmem:[#allocation2 + $0xc0] sm:$0xff]   ;;  %v916_v4 = vld [vmem:[#allocation2 + $0x138] sm:$0xff]   ;;  %v917_v5 = vld [vmem:[#allocation2 + $0x130] sm:$0xff]  }
  0x28   :  { %798 = vmatprep.subr.bf16.mxu0 %v972_v0  ;;  %v918_v6 = vld [vmem:[#allocation2 + $0x128] sm:$0xff]  }
  0x29   :  { %v922_v20 = vld [vmem:[#allocation2 + $0x108] sm:$0xff]  }
  0x2a   :  { %783 = vmatpush3.bf16.msra.mxu1 %v887_v7  ;;  %v919_v7 = vld [vmem:[#allocation2 + $0x120] sm:$0xff]  }
  0x2b   :  { %784 = vmatprep.subr.bf16.mxu1 %v972_v0  ;;  %799 = vmatpush3.bf16.msra.mxu0 %v893_v13 }
  0x2c   :  { %800 = vmatprep.subr.bf16.mxu0 %v972_v0 }
  0x2e   :  { %785 = vmatpush3.bf16.msra.mxu1 %v888_v8  ;;  %v920_v8 = vld [vmem:[#allocation2 + $0x118] sm:$0xff]  }
  0x2f   :  { %786 = vmatprep.subr.bf16.mxu1 %v972_v0  ;;  %801 = vmatpush3.bf16.msra.mxu0 %v894_v14 }
  0x30   :  { %802 = vmatprep.subr.bf16.mxu0 %v972_v0 }
  0x32   :  { %787 = vmatpush3.bf16.msra.mxu1 %v889_v9  ;;  %v921_v9 = vld [vmem:[#allocation2 + $0x110] sm:$0xff]  }
  0x33   :  { %788 = vmatprep.subr.bf16.mxu1 %v972_v0  ;;  %803 = vmatpush3.bf16.msra.mxu0 %v895_v15 }
  0x34   :  { %804 = vmatprep.subr.bf16.mxu0 %v972_v0 }
  0x36   :  { %789 = vmatpush3.bf16.msra.mxu1 %v890_v10  ;;  %v357_v10 = vsub.s32 3, %v1038_v19 }
  0x37   :  { %790 = vmatprep.subr.bf16.mxu1 %v972_v0  ;;  %805 = vmatpush3.bf16.msra.mxu0 %v896_v16 }
  0x38   :  { %806 = vmatprep.subr.bf16.mxu0 %v972_v0 }
  0x3a   :  { %791 = vmatpush3.bf16.msra.mxu1 %v891_v11  ;;  %v358_v11 = vrot.slane %v1041_v21, %v357_v10 }
  0x3b   :  { %816 = vmatprep.subr.bf16.mxu1 %v972_v0  ;;  %807 = vmatpush3.bf16.msra.mxu0 %v897_v17 }
  0x3c   :  { %808 = vmatprep.subr.bf16.mxu0 %v972_v0 }
  0x3f   :  { %809 = vmatpush3.bf16.msra.mxu0 %v898_v30 }
  0x40   :  { %810 = vmatprep.subr.bf16.mxu0 %v972_v0 }
  0x43   :  { %811 = vmatpush3.bf16.msra.mxu0 %v899_v31 }
  0x44   :  { %836 = vmatprep.subr.bf16.mxu0 %v972_v0 }
  0xe5   :  { %v104_v23 = vpop.f32.mrf.mxu0 }
  0xe6   :  { %v105_v24 = vadd.f32 %v104_v23, %v53_v22  ;;  %v923_v22 = vld [vmem:[#allocation2 + $0x100] sm:$0xff]   ;;  %v468_v23 = vsub.s32 4, %v1038_v19 }
  0xe7   :  { %v774_v25 = vpop.f32.mrf.mxu0 }
  0xe8   :  { %v110_v26 = vmax.f32 %v105_v24, 0.0  ;;  %v469_v24 = vrot.slane %v1041_v21, %v468_v23 }
  0xe9   :  { %v107_v27 = vpop.f32.mrf.mxu0 }
  0xea   :  { %v127_v28 = vpack.c.bf16 %v110_v26, %v110_v26 }
  0xeb   :  { %v775_v29 = vpop.f32.mrf.mxu0 }
  0xec   :  { %793 = vmatmul.mubr.bf16.vlgmr.msra.gmra.mxu1 %v127_v28 }
  0xed   :  { %832 = vmatprep.mubr.msk.bf16.mxu1 %vm973_vm0, %v972_v0  ;;  %817 = vmatpush3.bf16.msra.mxu1 %v900_v32  ;;  %v579_v32 = vsub.s32 5, %v1038_v19 }
  0xee   :  { %818 = vmatprep.subr.bf16.mxu1 %v972_v0 }
  0xf1   :  { %819 = vmatpush3.bf16.msra.mxu1 %v901_v33  ;;  %v580_v33 = vrot.slane %v1041_v21, %v579_v32 }
  0xf2   :  { %820 = vmatprep.subr.bf16.mxu1 %v972_v0 }
  0xf5   :  { %821 = vmatpush3.bf16.msra.mxu1 %v902_v34 }
  0xf6   :  { %822 = vmatprep.subr.bf16.mxu1 %v972_v0 }
  0xf9   :  { %823 = vmatpush3.bf16.msra.mxu1 %v903_v35 }
  0xfa   :  { %824 = vmatprep.subr.bf16.mxu1 %v972_v0 }
  0xfd   :  { %825 = vmatpush3.bf16.msra.mxu1 %v904_v36 }
  0xfe   :  { %826 = vmatprep.subr.bf16.mxu1 %v972_v0 }
 0x101   :  { %827 = vmatpush3.bf16.msra.mxu1 %v905_v37 }
 0x102   :  { %828 = vmatprep.subr.bf16.mxu1 %v972_v0 }
 0x105   :  { %829 = vmatpush3.bf16.msra.mxu1 %v906_v38 }
 0x106   :  { %830 = vmatprep.subr.bf16.mxu1 %v972_v0 }
 0x109   :  { %831 = vmatpush3.bf16.msra.mxu1 %v907_v50 }
 0x10a   :  { %856 = vmatprep.subr.bf16.mxu1 %v972_v0 }
 0x1ac   :  { %v214_v42 = vpop.f32.mrf.mxu1 }
 0x1ad   :  { %v215_v43 = vadd.f32 %v214_v42, %v131_v40 }
 0x1ae   :  { %v794_v44 = vpop.f32.mrf.mxu1 }
 0x1af   :  { %v223_v45 = vmax.f32 %v215_v43, 0.0 }
 0x1b0   :  { %v217_v46 = vpop.f32.mrf.mxu1 }
 0x1b1   :  { %v226_v47 = vsel %vm222_vm2, %v223_v45, %v215_v43 }
 0x1b2   :  { %v244_v48 = vpack.c.bf16 %v226_v47, %v226_v47  ;;  %v795_v49 = vpop.f32.mrf.mxu1 }
 0x1b4   :  { %813 = vmatmul.mubr.bf16.vlgmr.msra.gmra.mxu0 %v244_v48 }
 0x1b5   :  { %852 = vmatprep.mubr.msk.bf16.mxu0 %vm973_vm0, %v972_v0  ;;  %837 = vmatpush3.bf16.msra.mxu0 %v908_v51 }
 0x1b6   :  { %838 = vmatprep.subr.bf16.mxu0 %v972_v0 }
 0x1b9   :  { %839 = vmatpush3.bf16.msra.mxu0 %v909_v52 }
 0x1ba   :  { %840 = vmatprep.subr.bf16.mxu0 %v972_v0 }
 0x1bd   :  { %841 = vmatpush3.bf16.msra.mxu0 %v910_v53 }
 0x1be   :  { %842 = vmatprep.subr.bf16.mxu0 %v972_v0 }
 0x1c1   :  { %843 = vmatpush3.bf16.msra.mxu0 %v911_v54 }
 0x1c2   :  { %844 = vmatprep.subr.bf16.mxu0 %v972_v0 }
 0x1c5   :  { %845 = vmatpush3.bf16.msra.mxu0 %v912_v55 }
 0x1c6   :  { %846 = vmatprep.subr.bf16.mxu0 %v972_v0 }
 0x1c9   :  { %847 = vmatpush3.bf16.msra.mxu0 %v913_v56 }
 0x1ca   :  { %848 = vmatprep.subr.bf16.mxu0 %v972_v0 }
 0x1cd   :  { %849 = vmatpush3.bf16.msra.mxu0 %v914_v2 }
 0x1ce   :  { %850 = vmatprep.subr.bf16.mxu0 %v972_v0 }
 0x1d1   :  { %851 = vmatpush3.bf16.msra.mxu0 %v915_v3 }
 0x274   :  { %v331_v59 = vpop.f32.mrf.mxu0 }
 0x275   :  { %v332_v60 = vadd.f32 %v331_v59, %v248_v58 }
 0x276   :  { %v814_v61 = vpop.f32.mrf.mxu0 }
 0x277   :  { %v354_v62 = vpack.c.bf16 %v332_v60, %v332_v60 }
 0x278   :  { %v334_v63 = vpop.f32.mrf.mxu0 }
 0x279   :  { %833 = vmatmul.mubr.bf16.vlgmr.msra.gmra.mxu1 %v354_v62 }
 0x27a   :  { %v815_v1 = vpop.f32.mrf.mxu0  ;;  %872 = vmatprep.mubr.msk.bf16.mxu1 %vm973_vm0, %v972_v0  ;;  %857 = vmatpush3.bf16.msra.mxu1 %v916_v4 }
 0x27b   :  { %858 = vmatprep.subr.bf16.mxu1 %v972_v0 }
 0x27e   :  { %859 = vmatpush3.bf16.msra.mxu1 %v917_v5 }
 0x27f   :  { %860 = vmatprep.subr.bf16.mxu1 %v972_v0 }
 0x282   :  { %861 = vmatpush3.bf16.msra.mxu1 %v918_v6 }
 0x283   :  { %862 = vmatprep.subr.bf16.mxu1 %v972_v0 }
 0x286   :  { %863 = vmatpush3.bf16.msra.mxu1 %v919_v7 }
 0x287   :  { %864 = vmatprep.subr.bf16.mxu1 %v972_v0 }
 0x28a   :  { %865 = vmatpush3.bf16.msra.mxu1 %v920_v8 }
 0x28b   :  { %866 = vmatprep.subr.bf16.mxu1 %v972_v0 }
 0x28e   :  { %867 = vmatpush3.bf16.msra.mxu1 %v921_v9 }
 0x28f   :  { %868 = vmatprep.subr.bf16.mxu1 %v972_v0 }
 0x292   :  { %869 = vmatpush3.bf16.msra.mxu1 %v922_v20 }
 0x293   :  { %870 = vmatprep.subr.bf16.mxu1 %v972_v0 }
 0x296   :  { %871 = vmatpush3.bf16.msra.mxu1 %v923_v22 }
 0x339   :  { %v441_v12 = vpop.f32.mrf.mxu1 }
 0x33a   :  { %v442_v13 = vadd.f32 %v441_v12, %v358_v11 }
 0x33b   :  { %v834_v14 = vpop.f32.mrf.mxu1 }
 0x33c   :  { %v447_v15 = vmax.f32 %v442_v13, 0.0 }
 0x33d   :  { %v444_v16 = vpop.f32.mrf.mxu1 }
 0x33e   :  { %v465_v17 = vpack.c.bf16 %v447_v15, %v447_v15 }
 0x33f   :  { %v835_v18 = vpop.f32.mrf.mxu1 }
 0x340   :  { %853 = vmatmul.mubr.bf16.vlgmr.msra.gmra.mxu0 %v465_v17 }
 0x400   :  { %v552_v25 = vpop.f32.mrf.mxu0 }
 0x401   :  { %v553_v26 = vadd.f32 %v552_v25, %v469_v24 }
 0x402   :  { %v854_v27 = vpop.f32.mrf.mxu0 }
 0x403   :  { %v558_v28 = vmax.f32 %v553_v26, 0.0 }
 0x404   :  { %v555_v29 = vpop.f32.mrf.mxu0 }
 0x405   :  { %v576_v30 = vpack.c.bf16 %v558_v28, %v558_v28 }
 0x406   :  { %v855_v31 = vpop.f32.mrf.mxu0 }
 0x407   :  { %873 = vmatmul.mubr.bf16.vlgmr.msra.gmra.mxu1 %v576_v30 }
 0x4c7   :  { %v663_v34 = vpop.f32.mrf.mxu1 }
 0x4c8   :  { %v664_v0 = vadd.f32 %v663_v34, %v580_v33 }
 0x4c9   :  { %v874_v35 = vpop.f32.mrf.mxu1 }
 0x4ca   :  { %670 = vst.msk [vmem:[%s1091_s4] sm:$0xff] %vm669_vm3, %v664_v0 }
 0x4cb   :  { %v666_v36 = vpop.f32.mrf.mxu1 }
 0x4cd   :  { %v875_v37 = vpop.f32.mrf.mxu1 }
 0x4ce   :  { %675 = vsyncpa [#allocation3], 1 }
 0x4cf   :  { %676 = vsyncpa [#allocation5], 1 }

</bundles_post_ra>
